<compile_context>
chip_gen: v7x
topology: tpu7x:2x2x1
jax: 0.10.0
libtpu: 0.0.40
codegen_flags: <defaults>
</compile_context>

<pallas_src>
import jax
import jax.numpy as jnp
from jax.experimental import pallas as pl
from jax.experimental.pallas import tpu as pltpu


# --------------------------------------------------------------------------
# Kernel
# --------------------------------------------------------------------------
def _head_kernel(x_ref, w1_ref, b1_ref, w2_ref, b2_ref, o_ref):
    # x_ref : [TM, H]   CLS activations (f32); cast to weight dtype in-kernel.
    # w1_ref: [H, H]    dense weight, (in, out) layout, compute dtype, resident.
    # b1_ref: [1, H]    dense bias, f32, resident.
    # w2_ref: [H, LP]   out_proj weight, lane-padded to LP (mult of 128).
    # b2_ref: [1, LP]   out_proj bias, f32, zero-padded, resident.
    # o_ref : [TM, LP]  f32 logits (padded lanes sliced off by the wrapper).
    # Dropout is identity at inference time.
    x = x_ref[...].astype(w1_ref.dtype)                      # VPU cast, hidden
    h = jnp.dot(x, w1_ref[...], preferred_element_type=jnp.float32)
    h = jnp.tanh(h + b1_ref[...])                            # f32 VPU + EUP
    y = jnp.dot(h.astype(w2_ref.dtype), w2_ref[...],
                preferred_element_type=jnp.float32)
    o_ref[...] = (y + b2_ref[...]).astype(o_ref.dtype)


# --------------------------------------------------------------------------
# One-time (model-load) parameter preparation
# --------------------------------------------------------------------------
def prepare_head_params(w_dense, b_dense, w_out, b_out,
                        *, compute_dtype=jnp.bfloat16):
    """Cast weights to the compute dtype and lane-pad num_labels to a
    multiple of 128.  Run ONCE at model-load time, not per forward."""
    H = w_dense.shape[0]
    L = w_out.shape[1]
    LP = pl.cdiv(L, 128) * 128
    w1 = w_dense.astype(compute_dtype)                        # [H, H]
    b1 = b_dense.reshape(1, H).astype(jnp.float32)            # [1, H]
    w2 = jnp.zeros((H, LP), compute_dtype).at[:, :L].set(
        w_out.astype(compute_dtype))                          # [H, LP]
    b2 = jnp.zeros((1, LP), jnp.float32).at[:, :L].set(
        b_out.reshape(1, L).astype(jnp.float32))              # [1, LP]
    return w1, b1, w2, b2


# --------------------------------------------------------------------------
# Wrapper
# --------------------------------------------------------------------------
def _round_up(x, m):
    return ((x + m - 1) // m) * m


def _num_tensorcores():
    """Best-effort TensorCore count sharing this kernel's grid (heuristic)."""
    try:
        kind = jax.devices()[0].device_kind.lower()
    except Exception:
        return 1
    # v4 / v5p megacore and v7x expose 2 TensorCores per device.
    return 2 if any(t in kind for t in ("v4", "v5p", "v7", "7x")) else 1


def roberta_classification_head(features, w1, b1, w2, b2, *, num_labels,
                                block_b=512, min_batch_blocks=None):
    """features: [B, S, H].  w1/b1/w2/b2 from prepare_head_params().
    Returns f32 logits [B, num_labels].

    block_b: max batch-tile rows.  512 keeps the per-step working set a few
      MiB in bf16 at H=1024 (single-buffered weights), inside v5e/v6e/v7x
      scoped VMEM, and amortizes per-step pipeline overhead.
    min_batch_blocks: force at least this many grid steps when B >= 16 so
      multi-TensorCore chips split the batch.  None = auto-detect.
    """
    # CLS-token slice kept as JAX glue (fuses with the producer under jit).
    x = features[:, 0, :]                                     # [B, H]
    B, H = x.shape
    LP = w2.shape[1]
    L = num_labels
    cdt = w1.dtype

    if min_batch_blocks is None:
        min_batch_blocks = _num_tensorcores()

    # --- batch tiling: divisible tiles -> unmasked, lane-dense stores ------
    if B <= block_b and (min_batch_blocks <= 1 or B < 16):
        tm, b_pad = B, B                       # single full-extent tile
    else:
        tm = min(block_b,
                 max(8, _round_up(pl.cdiv(B, max(min_batch_blocks, 1)), 8)))
        b_pad = _round_up(B, tm)
        if b_pad != B:                         # pad out the ragged tail
            x = jnp.pad(x, ((0, b_pad - B), (0, 0)))
    grid = (b_pad // tm,)

    # --- advisory cost estimate (uses LP: actual MXU work) ------------------
    cost = pl.CostEstimate(
        flops=2 * b_pad * H * (H + LP),
        transcendentals=b_pad * H,                            # tanh
        bytes_accessed=(b_pad * H * x.dtype.itemsize
                        + w1.size * w1.dtype.itemsize
                        + w2.size * w2.dtype.itemsize
                        + b1.size * b1.dtype.itemsize
                        + b2.size * b2.dtype.itemsize
                        + b_pad * LP * 4),
    )

    # --- VMEM budget (weights single-buffered, act/out double-buffered) ----
    est_vmem = (2 * tm * H * x.dtype.itemsize        # x tiles
                + 2 * tm * LP * 4                    # out tiles
                + H * (H + LP) * cdt.itemsize        # resident weights
                + (H + LP) * 4)                      # resident biases
    vmem_limit = None
    if est_vmem > (12 << 20):                        # otherwise keep default
        vmem_limit = int(min(est_vmem + (8 << 20), 96 << 20))

    resident = dict(pipeline_mode=pl.Buffered(1))    # constant blocks: 1 buf

    out = pl.pallas_call(
        _head_kernel,
        out_shape=jax.ShapeDtypeStruct((b_pad, LP), jnp.float32),
        grid_spec=pltpu.PrefetchScalarGridSpec(
            num_scalar_prefetch=0,
            grid=grid,
            in_specs=[
                pl.BlockSpec((tm, H), lambda i: (i, 0)),            # x tile
                pl.BlockSpec((H, H), lambda i: (0, 0), **resident),  # W1
                pl.BlockSpec((1, H), lambda i: (0, 0), **resident),  # b1
                pl.BlockSpec((H, LP), lambda i: (0, 0), **resident),  # W2
                pl.BlockSpec((1, LP), lambda i: (0, 0), **resident),  # b2
            ],
            out_specs=pl.BlockSpec((tm, LP), lambda i: (i, 0)),
        ),
        compiler_params=pltpu.CompilerParams(
            dimension_semantics=("parallel",),                # megacore split
            vmem_limit_bytes=vmem_limit),
        cost_estimate=cost,
    )(x, w1, b1, w2, b2)

    return out[:B, :L]


# --------------------------------------------------------------------------
# Reference + self-test
# --------------------------------------------------------------------------
def _reference(features, w_dense, b_dense, w_out, b_out):
    x = features[:, 0, :]
    h = jnp.tanh(x @ w_dense + b_dense)
    return h @ w_out + b_out


if __name__ == "__main__":
    # Synthetic config: hidden_size=32, num_labels=4, batch=2, seq=8.
    B, S, H, L = 2, 8, 32, 4

    key = jax.random.PRNGKey(0)
    k_feat, k_w1, k_b1, k_w2, k_b2 = jax.random.split(key, 5)

    features = jax.random.normal(k_feat, (B, S, H), dtype=jnp.float32)
    w_dense = jax.random.normal(k_w1, (H, H), dtype=jnp.float32) * 0.02
    b_dense = jax.random.normal(k_b1, (H,), dtype=jnp.float32) * 0.02
    w_out = jax.random.normal(k_w2, (H, L), dtype=jnp.float32) * 0.02
    b_out = jax.random.normal(k_b2, (L,), dtype=jnp.float32) * 0.02

    ref = _reference(features, w_dense, b_dense, w_out, b_out)

    head = jax.jit(
        roberta_classification_head,
        static_argnames=("num_labels", "block_b", "min_batch_blocks"))

    # f32 compute path: must match the reference tightly.
    p_f32 = prepare_head_params(w_dense, b_dense, w_out, b_out,
                                compute_dtype=jnp.float32)
    logits_f32 = jax.block_until_ready(head(features, *p_f32, num_labels=L))
    assert logits_f32.shape == (B, L)
    assert jnp.allclose(logits_f32, ref, atol=1e-5, rtol=1e-5)

    # bf16 MXU path (default production path): f32 accumulation, loose tol.
    p_bf16 = prepare_head_params(w_dense, b_dense, w_out, b_out,
                                 compute_dtype=jnp.bfloat16)
    logits_bf16 = jax.block_until_ready(head(features, *p_bf16, num_labels=L))
    assert logits_bf16.shape == (B, L)
    assert jnp.allclose(logits_bf16, ref, atol=3e-2, rtol=3e-2)

    print("KERNEL_OK")
</pallas_src>

<mosaic_0001>
module attributes {stable_mosaic.version = 11 : i64} {
  func.func @_head_kernel(%arg0: i32, %arg1: memref<2x32xf32, #tpu.memory_space<vmem>>, %arg2: memref<32x32xf32, #tpu.memory_space<vmem>>, %arg3: memref<1x32xf32, #tpu.memory_space<vmem>>, %arg4: memref<32x128xf32, #tpu.memory_space<vmem>>, %arg5: memref<1x128xf32, #tpu.memory_space<vmem>>, %arg6: memref<2x128xf32, #tpu.memory_space<vmem>>) attributes {dimension_semantics = [#tpu.dimension_semantics<parallel>], iteration_bounds = array<i64: 1>, scalar_prefetch = 0 : i64, scratch_operands = 0 : i64, tpu.core_type = #tpu.core_type<tc>, window_params = [{transform_indices = @transform_0, window_bounds = array<i64: 2, 32>}, {pipeline_mode = #tpu.pipeline_mode<synchronous>, transform_indices = @transform_1, window_bounds = array<i64: 32, 32>}, {pipeline_mode = #tpu.pipeline_mode<synchronous>, transform_indices = @transform_2, window_bounds = array<i64: 1, 32>}, {pipeline_mode = #tpu.pipeline_mode<synchronous>, transform_indices = @transform_3, window_bounds = array<i64: 32, 128>}, {pipeline_mode = #tpu.pipeline_mode<synchronous>, transform_indices = @transform_4, window_bounds = array<i64: 1, 128>}, {transform_indices = @transform_5, window_bounds = array<i64: 2, 128>}]} {
    %c0 = arith.constant 0 : index
    %c0_0 = arith.constant 0 : index
    %0 = vector.load %arg1[%c0, %c0_0] : memref<2x32xf32, #tpu.memory_space<vmem>>, vector<2x32xf32>
    %c0_1 = arith.constant 0 : index
    %c0_2 = arith.constant 0 : index
    %1 = vector.load %arg2[%c0_1, %c0_2] : memref<32x32xf32, #tpu.memory_space<vmem>>, vector<32x32xf32>
    %cst = arith.constant dense<0.000000e+00> : vector<2x32xf32>
    %2 = tpu.matmul %0, %1, %cst {dimension_numbers = #tpu.dot_dimension_numbers<[1], [0], [0], [1], [0, 0, 1, 1], [], []>} : vector<2x32xf32>, vector<32x32xf32>, vector<2x32xf32> -> vector<2x32xf32>
    %c0_3 = arith.constant 0 : index
    %c0_4 = arith.constant 0 : index
    %3 = vector.load %arg3[%c0_3, %c0_4] : memref<1x32xf32, #tpu.memory_space<vmem>>, vector<1x32xf32>
    %4 = vector.broadcast %3 : vector<1x32xf32> to vector<2x32xf32>
    %5 = arith.addf %2, %4 : vector<2x32xf32>
    %6 = math.tanh %5 : vector<2x32xf32>
    %c0_5 = arith.constant 0 : index
    %c0_6 = arith.constant 0 : index
    %7 = vector.load %arg4[%c0_5, %c0_6] : memref<32x128xf32, #tpu.memory_space<vmem>>, vector<32x128xf32>
    %cst_7 = arith.constant dense<0.000000e+00> : vector<2x128xf32>
    %8 = tpu.matmul %6, %7, %cst_7 {dimension_numbers = #tpu.dot_dimension_numbers<[1], [0], [0], [1], [0, 0, 1, 1], [], []>} : vector<2x32xf32>, vector<32x128xf32>, vector<2x128xf32> -> vector<2x128xf32>
    %c0_8 = arith.constant 0 : index
    %c0_9 = arith.constant 0 : index
    %9 = vector.load %arg5[%c0_8, %c0_9] : memref<1x128xf32, #tpu.memory_space<vmem>>, vector<1x128xf32>
    %10 = vector.broadcast %9 : vector<1x128xf32> to vector<2x128xf32>
    %11 = arith.addf %8, %10 : vector<2x128xf32>
    %c0_10 = arith.constant 0 : index
    %c0_11 = arith.constant 0 : index
    %12 = vector.load %arg6[%c0_10, %c0_11] : memref<2x128xf32, #tpu.memory_space<vmem>>, vector<2x128xf32>
    tpu.vector_store %arg6[%c0_10, %c0_11], %11 {strides = array<i32>} : memref<2x128xf32, #tpu.memory_space<vmem>>, vector<2x128xf32>,
    return
  }
  func.func @transform_0(%arg0: i32) -> (i32, i32) {
    %c0_i32 = arith.constant 0 : i32
    %c0_i32_0 = arith.constant 0 : i32
    return %arg0, %c0_i32 : i32, i32
  }
  func.func @transform_1(%arg0: i32) -> (i32, i32) {
    %c0_i32 = arith.constant 0 : i32
    %c0_i32_0 = arith.constant 0 : i32
    %c0_i32_1 = arith.constant 0 : i32
    return %c0_i32, %c0_i32_0 : i32, i32
  }
  func.func @transform_2(%arg0: i32) -> (i32, i32) {
    %c0_i32 = arith.constant 0 : i32
    %c0_i32_0 = arith.constant 0 : i32
    %c0_i32_1 = arith.constant 0 : i32
    return %c0_i32, %c0_i32_0 : i32, i32
  }
  func.func @transform_3(%arg0: i32) -> (i32, i32) {
    %c0_i32 = arith.constant 0 : i32
    %c0_i32_0 = arith.constant 0 : i32
    %c0_i32_1 = arith.constant 0 : i32
    return %c0_i32, %c0_i32_0 : i32, i32
  }
  func.func @transform_4(%arg0: i32) -> (i32, i32) {
    %c0_i32 = arith.constant 0 : i32
    %c0_i32_0 = arith.constant 0 : i32
    %c0_i32_1 = arith.constant 0 : i32
    return %c0_i32, %c0_i32_0 : i32, i32
  }
  func.func @transform_5(%arg0: i32) -> (i32, i32) {
    %c0_i32 = arith.constant 0 : i32
    %c0_i32_0 = arith.constant 0 : i32
    return %arg0, %c0_i32 : i32, i32
  }
}

</mosaic_0001>

<bundles_post_ra>
// kernel: roberta_classification_head.1
= control target key start
LH: loop header
LB: loop body
LE: loop exit
PB: predicated region body
PF: predicated region fallthrough
CT: control target
= control target key end

     0   :  { %10 = vsyncpa [#allocation3], 0  ;;  %s452_s0 = inlined_call_operand.vmem [shape: f32[2,32], index: 0, kind: input, shape index: {}]   ;;  %s453_s1 = inlined_call_operand.hbm [shape: f32[32,32], index: 1, kind: input, shape index: {}]   ;;  %s454_s2 = inlined_call_operand.vmem [shape: f32[1,32], index: 2, kind: input, shape index: {}]   ;;  %s455_s3 = inlined_call_operand.hbm [shape: f32[32,128], index: 3, kind: input, shape index: {}]   ;;  %s456_s4 = inlined_call_operand.vmem [shape: f32[1,128], index: 4, kind: input, shape index: {}]   ;;  %s457_s5 = inlined_call_operand.hbm [shape: f32[2,128], index: 5, kind: output, shape index: {}]  }
   0x1   :  { %11 = vsyncpa [#allocation6], 0 }
   0x2   :  { %12 = vsyncpa [#allocation4], 0  ;;  %s367_s18 = smov [#allocation2]   ;;  %s295_s22 = scalar_lea.hbm %s453_s1, 512 }
   0x3   :  { %s20_s19 = sshll.u32 %s367_s18, 4  ;;  %p296_p0 = scmp.ne.s32.totalorder %s453_s1, %s295_s22  ;;  %s21_s19 = int_to_ptr.vmem [resolvable:$true] %s20_s19 }
   0x4   :  { %p299_p1 = scmp.lt.u32.totalorder %s295_s22, %s453_s1 }
   0x6   :  { %p301_p2 = pnand %p299_p1, %p296_p0 }
   0x8   :  { %304 = shalt.err (!%p301_p2)
}
   0x9   :  { %s305_s27 = scalar_lea.vmem %s21_s19, 512  ;;  %p310_p4 = scmp.lt.s32.totalorder %s21_s19, %s21_s19 }
   0xa   :  { %p306_p3 = scmp.ne.s32.totalorder %s21_s19, %s305_s27  ;;  %p311_p5 = scmp.lt.s32.totalorder %s305_s27, %s305_s27 }
   0xc   :  { %p312_p6 = por %p311_p5, %p310_p4 }
   0xe   :  { %p313_p7 = pnand %p312_p6, %p306_p3 }
  0x10   :  { %316 = shalt.err (!%p313_p7)
}
  0x11   :  { %s368_s28 = smov 128   ;;  %s369_s29 = smov 8  }
  0x12   :  { %26 = dma.hbm_to_vmem [thread:$0]  %s453_s1, 512, %s21_s19, [#allocation3], %s368_s28, %s368_s28, %s369_s29  }
  0x13   :  { %s370_s7 = smov [#allocation5]   ;;  %s317_s11 = scalar_lea.hbm %s455_s3, 512 }
  0x14   :  { %s34_s8 = sshll.u32 %s370_s7, 4  ;;  %p318_p8 = scmp.ne.s32.totalorder %s455_s3, %s317_s11  ;;  %s35_s8 = int_to_ptr.vmem [resolvable:$true] %s34_s8 }
  0x15   :  { %p321_p9 = scmp.lt.u32.totalorder %s317_s11, %s455_s3 }
  0x17   :  { %p323_p10 = pnand %p321_p9, %p318_p8 }
  0x19   :  { %326 = shalt.err (!%p323_p10)
}
  0x1a   :  { %s327_s16 = scalar_lea.vmem %s35_s8, 512  ;;  %p332_p12 = scmp.lt.s32.totalorder %s35_s8, %s35_s8 }
  0x1b   :  { %p328_p11 = scmp.ne.s32.totalorder %s35_s8, %s327_s16  ;;  %p333_p13 = scmp.lt.s32.totalorder %s327_s16, %s327_s16 }
  0x1d   :  { %p334_p0 = por %p333_p13, %p332_p12 }
  0x1f   :  { %p335_p1 = pnand %p334_p0, %p328_p11 }
  0x21   :  { %338 = shalt.err (!%p335_p1)
}
  0x22   :  { %40 = dma.hbm_to_vmem [thread:$0]  %s455_s3, 512, %s35_s8, [#allocation6], %s368_s28, %s368_s28, %s369_s29  }
  0x23   :  { %361 = dma.done.wait [#allocation3], 512  }
  0x24   :  { %362 = vsyncadd [#allocation3], 4294966784 }
  0x25   :  { %363 = dma.done.wait [#allocation6], 512  }
  0x26   :  { %364 = vsyncadd [#allocation6], 4294966784  ;;  %v371_v0 = vmov 0.0|0.0   ;;  %vm372_vm0 = vmmov 0   ;;  %v373_v1 = vmov 0.0   ;;  %v50_v2 = vld [vmem:[#allocation2] sm:$0xff] }
  0x27   :  { %273 = vmatprep.subr.bf16.mxu0 %v371_v0  ;;  %259 = vmatprep.mubr.msk.f32.mxu0 %vm372_vm0, %v373_v1  ;;  %v51_v3 = vld [vmem:[#allocation2 + $0x8] sm:$0xff]  ;;  %v52_v4 = vld [vmem:[#allocation2 + $0x10] sm:$0xff]  ;;  %v53_v6 = vld [vmem:[#allocation2 + $0x18] sm:$0xff]  ;;  %vm61_vm1 = vcmask 261120   ;;  %s374_s22 = smov [#allocation7]  }
  0x28   :  { %279 = vmatprep.subr.bf16.mxu1 %v371_v0  ;;  %270 = vmatprep.mubr.msk.f32.mxu1 %vm372_vm0, %v373_v1  ;;  %v274_v5 = vpack.c.bf16 %v51_v3, %v50_v2  ;;  %v277_v7 = vpack.c.bf16 %v53_v6, %v52_v4  ;;  %v49_v8 = vld [vmem:[%s452_s0] sm:$0x3]  ;;  %v137_v10 = vld [vmem:[#allocation5 + $0x8] sm:$0xff]  ;;  %v138_v11 = vld [vmem:[#allocation5 + $0x10] sm:$0xff]  ;;  %s227_s23 = sshll.u32 %s374_s22, 4  ;;  %s228_s23 = int_to_ptr.vmem [resolvable:$true] %s227_s23 }
  0x29   :  { %v136_v9 = vld [vmem:[#allocation5] sm:$0xff]  ;;  %v139_v13 = vld [vmem:[#allocation5 + $0x18] sm:$0xff]  ;;  %s339_s24 = scalar_lea.vmem %s228_s23, 32  ;;  %p344_p3 = scmp.lt.s32.totalorder %s228_s23, %s228_s23 }
  0x2a   :  { %275 = vmatpush3.bf16.msra.mxu0 %v274_v5  ;;  %v280_v12 = vpack.c.bf16 %v137_v10, %v136_v9  ;;  %v283_v14 = vpack.c.bf16 %v139_v13, %v138_v11  ;;  %v237_v15 = vld [vmem:[%s454_s2] ss:$0 sm:$0xff]  ;;  %p340_p2 = scmp.ne.s32.totalorder %s228_s23, %s339_s24  ;;  %p345_p4 = scmp.lt.s32.totalorder %s339_s24, %s339_s24 }
  0x2b   :  { %276 = vmatprep.subr.bf16.mxu0 %v371_v0  ;;  %v239_v20 = vld [vmem:[%s456_s4] ss:$0 sm:$0xff] }
  0x2c   :  { %281 = vmatpush3.bf16.msra.mxu1 %v280_v12  ;;  %p346_p5 = por %p345_p4, %p344_p3 }
  0x2d   :  { %282 = vmatprep.subr.bf16.mxu1 %v371_v0 }
  0x2e   :  { %278 = vmatpush3.bf16.msra.mxu0 %v277_v7  ;;  %p347_p6 = pnand %p346_p5, %p340_p2 }
  0x30   :  { %284 = vmatpush3.bf16.msra.mxu1 %v283_v14 }
  0x31   :  { %260 = vmatmul.mubr.msk.f32.vlgmr.msra.gmra.mrb[0].mxu0 %vm61_vm1, %v49_v8 }
 0x104   :  { %v131_v16 = vpop.f32.mrb[0].mxu0 }
 0x105   :  { %v132_v17 = vadd.f32 %v237_v15, %v131_v16  ;;  %v261_v18 = vpop.f32.mrb[1].mxu0 }
 0x107   :  { %293 = vtanh.f32 %v132_v17 }
 0x111   :  { %v294_v19 = vpop.eup %293 }
 0x112   :  { %271 = vmatmul.mubr.msk.f32.vlgmr.msra.gmra.mrb[0].mxu1 %vm61_vm1, %v294_v19 }
 0x1e5   :  { %v216_v21 = vpop.f32.mrb[0].mxu1 }
 0x1e6   :  { %v217_v22 = vadd.f32 %v239_v20, %v216_v21  ;;  %v272_v23 = vpop.f32.mrb[1].mxu1 }
 0x1e8   :  { %220 = vst [vmem:[#allocation7] sm:$0x3] %v217_v22 }
 0x1e9   :  { %350 = shalt.err (!%p347_p6)
}
 0x1ea   :  { %s351_s26 = scalar_lea.hbm %s457_s5, 32 }
 0x1eb   :  { %p352_p7 = scmp.ne.s32.totalorder %s457_s5, %s351_s26  ;;  %p355_p8 = scmp.lt.u32.totalorder %s351_s26, %s457_s5 }
 0x1ed   :  { %p357_p9 = pnand %p355_p8, %p352_p7 }
 0x1ef   :  { %360 = shalt.err (!%p357_p9)
}
 0x1f0   :  { %230 = dma.vmem_to_hbm [thread:$0]  %s228_s23, 32, %s457_s5, [#allocation4]  }
 0x1f1   :  { %365 = dma.done.wait [#allocation4], 32  }
 0x1f2   :  { %366 = vsyncadd [#allocation4], 4294967264 }
 0x1f3   :  { %234 = vsyncpa [#allocation3], 1 }
 0x1f4   :  { %235 = vsyncpa [#allocation6], 1 }
 0x1f5   :  { %236 = vsyncpa [#allocation4], 1 }

</bundles_post_ra>
